<compile_context>
chip_gen: v5e
topology: v5e:2x2
jax: 0.10.0
libtpu: 0.0.40
codegen_flags: <defaults>
</compile_context>

<pallas_src>
import functools

import jax
import jax.numpy as jnp
from jax.experimental import pallas as pl
from jax.experimental.pallas import tpu as pltpu


_VMEM_LIMIT = 48 * 1024 * 1024  # explicit scoped-VMEM budget (safe on v5e/v6e/v7x)


# ----------------------------------------------------------------------------
# helpers
# ----------------------------------------------------------------------------
def _pick_tile(dim, candidates):
    """Largest candidate tile that evenly divides `dim`; else the full dim."""
    for c in candidates:
        if dim >= c and dim % c == 0:
            return c
    return dim


def _pick_tm(M, K, bytes_per_elem=2, budget=4 * 1024 * 1024):
    """Largest row tile whose full-K bf16 activation slab fits a VMEM budget."""
    for c in (1024, 512, 256, 128, 64, 32, 16, 8):
        if M >= c and M % c == 0 and c * K * bytes_per_elem <= budget:
            return c
    return M


def _cparams(sem):
    return pltpu.CompilerParams(dimension_semantics=sem,
                                vmem_limit_bytes=_VMEM_LIMIT)


# ----------------------------------------------------------------------------
# Tiled linear:  y = act(x @ w + b)         x, w, y bf16; accumulate/epilogue f32
# ----------------------------------------------------------------------------
def _linear_kernel(x_ref, w_ref, b_ref, o_ref, acc_ref, *, activation):
    k = pl.program_id(2)
    tk = w_ref.shape[0]

    @pl.when(k == 0)
    def _():
        acc_ref[...] = jnp.zeros_like(acc_ref)

    ks = pl.multiple_of(k * tk, tk)
    acc_ref[...] += jnp.dot(x_ref[:, pl.ds(ks, tk)], w_ref[...],
                            preferred_element_type=jnp.float32)

    @pl.when(k == pl.num_programs(2) - 1)
    def _():
        y = acc_ref[...] + b_ref[...]
        if activation == "gelu":
            # TODO(synk): HF BERT default GELU is the exact erf form; tanh approx
            # kept here for Mosaic-safe lowering (small numeric drift).
            y = jax.nn.gelu(y, approximate=True)
        elif activation == "tanh":
            y = jnp.tanh(y)
        o_ref[...] = y.astype(o_ref.dtype)


def linear(x, w, b, activation="none"):
    """x:[M,K] bf16, w:[K,N] bf16, b:[1,N] f32 -> [M,N] bf16."""
    M, K = x.shape
    N = w.shape[1]
    tm = _pick_tm(M, K)
    tn = _pick_tile(N, (512, 256, 128))
    tk = _pick_tile(K, (512, 256, 128))
    return pl.pallas_call(
        functools.partial(_linear_kernel, activation=activation),
        out_shape=jax.ShapeDtypeStruct((M, N), jnp.bfloat16),
        grid=(M // tm, N // tn, K // tk),
        in_specs=[
            # Full-K activation slab pinned per-i: not re-fetched across the N axis.
            pl.BlockSpec((tm, K), lambda i, j, k: (i, 0)),
            pl.BlockSpec((tk, tn), lambda i, j, k: (k, j)),
            pl.BlockSpec((1, tn), lambda i, j, k: (0, j)),
        ],
        out_specs=pl.BlockSpec((tm, tn), lambda i, j, k: (i, j)),
        scratch_shapes=[pltpu.VMEM((tm, tn), jnp.float32)],
        compiler_params=_cparams(("parallel", "parallel", "arbitrary")),
    )(x, w, b)


# ----------------------------------------------------------------------------
# Fused linear + residual + LayerNorm:  y = LN(x @ w + b + residual)
# ----------------------------------------------------------------------------
def _linear_res_ln_kernel(x_ref, w_ref, b_ref, r_ref, g_ref, bt_ref,
                          o_ref, acc_ref, *, eps):
    k = pl.program_id(1)

    @pl.when(k == 0)
    def _():
        acc_ref[...] = jnp.zeros_like(acc_ref)

    acc_ref[...] += jnp.dot(x_ref[...], w_ref[...],
                            preferred_element_type=jnp.float32)

    @pl.when(k == pl.num_programs(1) - 1)
    def _():
        h = acc_ref[...] + b_ref[...] + r_ref[...].astype(jnp.float32)
        mean = jnp.mean(h, axis=-1, keepdims=True)
        var = jnp.mean(jnp.square(h - mean), axis=-1, keepdims=True)
        inv = jax.lax.rsqrt(var + eps)
        o_ref[...] = ((h - mean) * inv * g_ref[...] + bt_ref[...]).astype(o_ref.dtype)


def linear_residual_ln(x, w, b, residual, gamma, beta, eps=1e-12):
    """LN(x @ w + b + residual); x:[M,K] bf16, w:[K,N] bf16, residual:[M,N] bf16."""
    M, K = x.shape
    N = w.shape[1]
    tm = _pick_tile(M, (1024, 512, 256, 128, 64, 32, 16, 8))
    tk = _pick_tile(K, (512, 256, 128))
    return pl.pallas_call(
        functools.partial(_linear_res_ln_kernel, eps=eps),
        out_shape=jax.ShapeDtypeStruct((M, N), jnp.bfloat16),
        grid=(M // tm, K // tk),
        in_specs=[
            pl.BlockSpec((tm, tk), lambda i, k: (i, k)),
            pl.BlockSpec((tk, N), lambda i, k: (k, 0)),
            pl.BlockSpec((1, N), lambda i, k: (0, 0)),
            pl.BlockSpec((tm, N), lambda i, k: (i, 0)),
            pl.BlockSpec((1, N), lambda i, k: (0, 0)),
            pl.BlockSpec((1, N), lambda i, k: (0, 0)),
        ],
        out_specs=pl.BlockSpec((tm, N), lambda i, k: (i, 0)),
        scratch_shapes=[pltpu.VMEM((tm, N), jnp.float32)],
        compiler_params=_cparams(("parallel", "arbitrary")),
    )(x, w, b, residual, gamma, beta)


# ----------------------------------------------------------------------------
# Row-tiled LayerNorm (embeddings): f32 in, bf16 out, math in f32.
# ----------------------------------------------------------------------------
def _ln_kernel(x_ref, g_ref, b_ref, o_ref, *, eps):
    h = x_ref[...]
    mean = jnp.mean(h, axis=-1, keepdims=True)
    var = jnp.mean(jnp.square(h - mean), axis=-1, keepdims=True)
    inv = jax.lax.rsqrt(var + eps)
    o_ref[...] = ((h - mean) * inv * g_ref[...] + b_ref[...]).astype(o_ref.dtype)


def layernorm(x, gamma, beta, eps=1e-12):
    M, E = x.shape
    tm = _pick_tile(M, (512, 256, 128, 64, 32, 16, 8))
    return pl.pallas_call(
        functools.partial(_ln_kernel, eps=eps),
        out_shape=jax.ShapeDtypeStruct((M, E), jnp.bfloat16),
        grid=(M // tm,),
        in_specs=[
            pl.BlockSpec((tm, E), lambda i: (i, 0)),
            pl.BlockSpec((1, E), lambda i: (0, 0)),
            pl.BlockSpec((1, E), lambda i: (0, 0)),
        ],
        out_specs=pl.BlockSpec((tm, E), lambda i: (i, 0)),
        compiler_params=_cparams(("parallel",)),
    )(x, gamma, beta)


# ----------------------------------------------------------------------------
# Multi-head attention.
#   QKV is produced by a fused matmul whose columns are pre-permuted into
#   per-head-pair chunks [Q_pair | K_pair | V_pair] (each pair*Dh = 128 lanes for
#   BERT-base), so the grid (B, num_pairs) fetches only a lane-aligned
#   (S, 3*pair*Dh) slab per step and writes one lane-dense pair output block.
# ----------------------------------------------------------------------------
def _attn_kernel(qkv_ref, bias_ref, o_ref, *, pair, head_dim, scale):
    blk = qkv_ref[0]          # (S, 3*pair*Dh) bf16
    bias = bias_ref[0]        # (1, S) additive mask, f32
    d = head_dim
    outs = []
    for hh in range(pair):                               # static 1- or 2-way unroll
        lo = hh * d
        q = blk[:, lo:lo + d] * scale                    # pre-scale (S,Dh), not (S,S)
        k = blk[:, pair * d + lo:pair * d + lo + d]
        v = blk[:, 2 * pair * d + lo:2 * pair * d + lo + d]
        # q @ k^T without an explicit transpose: contract last dims of both.
        s = jax.lax.dot_general(q, k, (((1,), (1,)), ((), ())),
                                preferred_element_type=jnp.float32)
        s = s + bias                                     # mask math stays in f32
        m = jnp.max(s, axis=-1, keepdims=True)
        e = jnp.exp(s - m)
        denom = jnp.sum(e, axis=-1, keepdims=True)
        acc = jnp.dot(e.astype(jnp.bfloat16), v,
                      preferred_element_type=jnp.float32)
        # Fold the softmax normalization into the (S,Dh) output, not the (S,S) probs.
        acc = acc * pl.reciprocal(denom, approx=True)
        outs.append(acc)
    out = outs[0] if pair == 1 else jnp.concatenate(outs, axis=-1)
    o_ref[0] = out.astype(o_ref.dtype)


def attention(qkv, bias, *, num_heads, head_dim, scale):
    """qkv:[B,S,3E] bf16 (pair-chunk layout), bias:[B,1,S] f32 -> [B,S,E] bf16."""
    B, S, _ = qkv.shape
    E = num_heads * head_dim
    pair = 2 if num_heads % 2 == 0 else 1
    num_pairs = num_heads // pair
    chunk = 3 * pair * head_dim
    # TODO(synk): for very long sequences add a flash-style query-tile grid axis so
    # the (S, chunk) slab and (S,S) scores stay within VMEM on v7x.
    return pl.pallas_call(
        functools.partial(_attn_kernel, pair=pair, head_dim=head_dim, scale=scale),
        out_shape=jax.ShapeDtypeStruct((B, S, E), jnp.bfloat16),
        grid=(B, num_pairs),
        in_specs=[
            pl.BlockSpec((1, S, chunk), lambda b, p: (b, 0, p)),
            pl.BlockSpec((1, 1, S), lambda b, p: (b, 0, 0)),
        ],
        out_specs=pl.BlockSpec((1, S, pair * head_dim), lambda b, p: (b, 0, p)),
        compiler_params=_cparams(("parallel", "parallel")),
    )(qkv, bias)


# ----------------------------------------------------------------------------
# Parameter initialization (deterministic, synthetic).  Matmul weights bf16,
# biases / LN params f32 as (1, N) rows; head weights (pooler/classifier) f32.
# ----------------------------------------------------------------------------
def init_params(key, cfg):
    E = cfg["embedding_size"]
    I = cfg["intermediate_size"]
    H = cfg["num_heads"]
    Dh = E // H
    pair = 2 if H % 2 == 0 else 1
    keys = iter(jax.random.split(key, 8 + 8 * cfg["num_layers"]))

    def fw(shape):   # f32
        return 0.02 * jax.random.normal(next(keys), shape, dtype=jnp.float32)

    def w(shape):    # bf16
        return fw(shape).astype(jnp.bfloat16)

    def fused_qkv():
        """Fused QKV weight with columns permuted into per-head-pair chunks."""
        wq, wk, wv = fw((E, E)), fw((E, E)), fw((E, E))
        chunks = []
        for p in range(H // pair):
            sl = slice(p * pair * Dh, (p + 1) * pair * Dh)
            chunks += [wq[:, sl], wk[:, sl], wv[:, sl]]
        return jnp.concatenate(chunks, axis=1).astype(jnp.bfloat16)

    def zeros(n):
        return jnp.zeros((1, n), jnp.float32)

    def ones(n):
        return jnp.ones((1, n), jnp.float32)

    params = {
        "tok_emb": fw((cfg["vocab_size"], E)),
        "pos_emb": fw((cfg["max_position"], E)),
        "type_emb": fw((cfg["type_vocab_size"], E)),
        "emb_ln_g": ones(E), "emb_ln_b": zeros(E),
        "layers": [],
        "pool_w": fw((E, E)), "pool_b": jnp.zeros((E,), jnp.float32),
        "cls_w": fw((E, 1)), "cls_b": jnp.zeros((1,), jnp.float32),
    }
    for _ in range(cfg["num_layers"]):
        params["layers"].append({
            "wqkv": fused_qkv(), "bqkv": zeros(3 * E),   # fused Q|K|V (pair-chunked)
            "wo": w((E, E)), "bo": zeros(E),
            "ln1_g": ones(E), "ln1_b": zeros(E),
            "w1": w((E, I)), "b1": zeros(I),
            "w2": w((I, E)), "b2": zeros(E),
            "ln2_g": ones(E), "ln2_b": zeros(E),
        })
    return params


# ----------------------------------------------------------------------------
# BERT forward + classification head
# ----------------------------------------------------------------------------
def bert_forward(params, input_ids, token_type_ids, attention_mask, cfg):
    B, S = input_ids.shape
    E = cfg["embedding_size"]
    H = cfg["num_heads"]
    Dh = E // H

    # Embeddings (gathers are plain-JAX glue), then row-tiled LayerNorm in Pallas.
    emb = (params["tok_emb"][input_ids]
           + params["pos_emb"][:S][None, :, :]
           + params["type_emb"][token_type_ids])
    x = layernorm(emb.reshape(B * S, E), params["emb_ln_g"], params["emb_ln_b"])

    # Additive attention-mask bias in f32: [B, 1, S].
    bias = ((1.0 - attention_mask.astype(jnp.float32)) * -1e9).reshape(B, 1, S)
    scale = 1.0 / (Dh ** 0.5)

    for layer in params["layers"]:
        # --- self attention (fused QKV in bf16, pair-chunked heads) ------------
        qkv = linear(x, layer["wqkv"], layer["bqkv"])              # (B*S, 3E) bf16
        att = attention(qkv.reshape(B, S, 3 * E), bias,
                        num_heads=H, head_dim=Dh, scale=scale)     # (B, S, E) bf16
        x = linear_residual_ln(att.reshape(B * S, E), layer["wo"], layer["bo"],
                               x, layer["ln1_g"], layer["ln1_b"])
        # --- feed forward (bias+residual+LN fused into FFN-2) -------------------
        f = linear(x, layer["w1"], layer["b1"], activation="gelu")
        x = linear_residual_ln(f, layer["w2"], layer["b2"],
                               x, layer["ln2_g"], layer["ln2_b"])

    # BERT pooled output: [CLS] token through dense + tanh, in plain XLA (tiny).
    cls = x.reshape(B, S, E)[:, 0, :].astype(jnp.float32)
    pooled = jnp.tanh(cls @ params["pool_w"] + params["pool_b"])
    return pooled                                                  # (B, E) f32


def sentiment_classification_bert(params, input_ids, token_type_ids,
                                  attention_mask, cfg):
    pooled = bert_forward(params, input_ids, token_type_ids, attention_mask, cfg)
    logits = pooled @ params["cls_w"] + params["cls_b"]            # (B, 1) f32, XLA
    return jnp.squeeze(logits)                                     # torch .squeeze()


# ----------------------------------------------------------------------------
if __name__ == "__main__":
    cfg = dict(vocab_size=100, embedding_size=32, num_layers=2, num_heads=2,
               intermediate_size=64, max_position=16, type_vocab_size=2)

    B, S = 2, 8
    root = jax.random.PRNGKey(0)
    k_params, k_ids = jax.random.split(root)

    params = init_params(k_params, cfg)
    input_ids = jax.random.randint(k_ids, (B, S), 0, cfg["vocab_size"], dtype=jnp.int32)
    token_type_ids = jnp.zeros((B, S), dtype=jnp.int32)
    attention_mask = jnp.ones((B, S), dtype=jnp.int32).at[1, 6:].set(0)  # pad tail of seq 1

    out = sentiment_classification_bert(params, input_ids, token_type_ids,
                                        attention_mask, cfg)
    out = jax.block_until_ready(out)
    assert out.shape == (B,) and out.dtype == jnp.float32
    print("KERNEL_OK")
</pallas_src>

<mosaic_0001>
module attributes {stable_mosaic.version = 11 : i64} {
  func.func @_ln_kernel(%arg0: i32, %arg1: memref<16x32xf32, #tpu.memory_space<vmem>>, %arg2: memref<1x32xf32, #tpu.memory_space<vmem>>, %arg3: memref<1x32xf32, #tpu.memory_space<vmem>>, %arg4: memref<16x32xbf16, #tpu.memory_space<vmem>>) attributes {dimension_semantics = [#tpu.dimension_semantics<parallel>], iteration_bounds = array<i64: 1>, scalar_prefetch = 0 : i64, scratch_operands = 0 : i64, tpu.core_type = #tpu.core_type<tc>, window_params = [{transform_indices = @transform_0, window_bounds = array<i64: 16, 32>}, {pipeline_mode = #tpu.pipeline_mode<synchronous>, transform_indices = @transform_1, window_bounds = array<i64: 1, 32>}, {pipeline_mode = #tpu.pipeline_mode<synchronous>, transform_indices = @transform_2, window_bounds = array<i64: 1, 32>}, {transform_indices = @transform_3, window_bounds = array<i64: 16, 32>}]} {
    %c0 = arith.constant 0 : index
    %c0_0 = arith.constant 0 : index
    %0 = vector.load %arg1[%c0, %c0_0] : memref<16x32xf32, #tpu.memory_space<vmem>>, vector<16x32xf32>
    %cst = arith.constant dense<0.000000e+00> : vector<16xf32>
    %1 = vector.multi_reduction <add>, %0, %cst [1] : vector<16x32xf32> to vector<16xf32>
    %2 = vector.shape_cast %1 : vector<16xf32> to vector<16x1xf32>
    %cst_1 = arith.constant 3.200000e+01 : f32
    %3 = vector.broadcast %cst_1 : f32 to vector<16x1xf32>
    %4 = arith.divf %2, %3 : vector<16x1xf32>
    %5 = vector.broadcast %4 : vector<16x1xf32> to vector<16x32xf32>
    %6 = arith.subf %0, %5 : vector<16x32xf32>
    %7 = arith.mulf %6, %6 : vector<16x32xf32>
    %cst_2 = arith.constant dense<0.000000e+00> : vector<16xf32>
    %8 = vector.multi_reduction <add>, %7, %cst_2 [1] : vector<16x32xf32> to vector<16xf32>
    %9 = vector.shape_cast %8 : vector<16xf32> to vector<16x1xf32>
    %cst_3 = arith.constant 3.200000e+01 : f32
    %10 = vector.broadcast %cst_3 : f32 to vector<16x1xf32>
    %11 = arith.divf %9, %10 : vector<16x1xf32>
    %cst_4 = arith.constant 9.99999996E-13 : f32
    %12 = vector.broadcast %cst_4 : f32 to vector<16x1xf32>
    %13 = arith.addf %11, %12 : vector<16x1xf32>
    %14 = math.rsqrt %13 : vector<16x1xf32>
    %15 = vector.broadcast %4 : vector<16x1xf32> to vector<16x32xf32>
    %16 = arith.subf %0, %15 : vector<16x32xf32>
    %17 = vector.broadcast %14 : vector<16x1xf32> to vector<16x32xf32>
    %18 = arith.mulf %16, %17 : vector<16x32xf32>
    %c0_5 = arith.constant 0 : index
    %c0_6 = arith.constant 0 : index
    %19 = vector.load %arg2[%c0_5, %c0_6] : memref<1x32xf32, #tpu.memory_space<vmem>>, vector<1x32xf32>
    %20 = vector.broadcast %19 : vector<1x32xf32> to vector<16x32xf32>
    %21 = arith.mulf %18, %20 : vector<16x32xf32>
    %c0_7 = arith.constant 0 : index
    %c0_8 = arith.constant 0 : index
    %22 = vector.load %arg3[%c0_7, %c0_8] : memref<1x32xf32, #tpu.memory_space<vmem>>, vector<1x32xf32>
    %23 = vector.broadcast %22 : vector<1x32xf32> to vector<16x32xf32>
    %24 = arith.addf %21, %23 : vector<16x32xf32>
    %25 = arith.truncf %24 : vector<16x32xf32> to vector<16x32xbf16>
    %c0_9 = arith.constant 0 : index
    %c0_10 = arith.constant 0 : index
    %26 = vector.load %arg4[%c0_9, %c0_10] : memref<16x32xbf16, #tpu.memory_space<vmem>>, vector<16x32xbf16>
    tpu.vector_store %arg4[%c0_9, %c0_10], %25 {strides = array<i32>} : memref<16x32xbf16, #tpu.memory_space<vmem>>, vector<16x32xbf16>,
    return
  }
  func.func @transform_0(%arg0: i32) -> (i32, i32) {
    %c0_i32 = arith.constant 0 : i32
    %c0_i32_0 = arith.constant 0 : i32
    return %arg0, %c0_i32 : i32, i32
  }
  func.func @transform_1(%arg0: i32) -> (i32, i32) {
    %c0_i32 = arith.constant 0 : i32
    %c0_i32_0 = arith.constant 0 : i32
    %c0_i32_1 = arith.constant 0 : i32
    return %c0_i32, %c0_i32_0 : i32, i32
  }
  func.func @transform_2(%arg0: i32) -> (i32, i32) {
    %c0_i32 = arith.constant 0 : i32
    %c0_i32_0 = arith.constant 0 : i32
    %c0_i32_1 = arith.constant 0 : i32
    return %c0_i32, %c0_i32_0 : i32, i32
  }
  func.func @transform_3(%arg0: i32) -> (i32, i32) {
    %c0_i32 = arith.constant 0 : i32
    %c0_i32_0 = arith.constant 0 : i32
    return %arg0, %c0_i32 : i32, i32
  }
}

</mosaic_0001>

<bundles_post_ra>
// kernel: tpu_custom_call.1
= control target key start
LH: loop header
LB: loop body
LE: loop exit
PB: predicated region body
PF: predicated region fallthrough
CT: control target
= control target key end

     0   :  { %8 = vsyncpa [#allocation3], 0  ;;  %s274_s0 = inlined_call_operand.hbm [shape: f32[16,32], index: 0, kind: input, shape index: {}]   ;;  %s275_s1 = inlined_call_operand.hbm [shape: f32[1,32], index: 1, kind: input, shape index: {}]   ;;  %s276_s2 = inlined_call_operand.vmem [shape: f32[1,32], index: 2, kind: input, shape index: {}]   ;;  %s277_s3 = inlined_call_operand.hbm [shape: bf16[16,32], index: 3, kind: output, shape index: {}]  }
   0x1   :  { %9 = vsyncpa [#allocation6], 0 }
   0x2   :  { %10 = vsyncpa [#allocation4], 0  ;;  %s15_s14 = sshll.u32 %s274_s0, 4  ;;  %s230_s15 = smov [#allocation2]   ;;  %s16_s14 = int_to_ptr.hbm [resolvable:$true] %s15_s14 }
   0x3   :  { %s17_s16 = sshll.u32 %s230_s15, 4  ;;  %s29_s19 = sshll.u32 %s275_s1, 4  ;;  %s18_s16 = int_to_ptr.vmem [resolvable:$true] %s17_s16  ;;  %s30_s19 = int_to_ptr.hbm [resolvable:$true] %s29_s19 }
   0x4   :  { %s231_s20 = smov 128   ;;  %s232_s21 = smov 8  }
   0x5   :  { %23 = dma.hbm_to_vmem [thread:$0]  %s16_s14, 256, %s18_s16, [#allocation3], %s231_s20, %s231_s20, %s232_s21  }
   0x6   :  { %s233_s22 = smov [#allocation5]  }
   0x7   :  { %s31_s23 = sshll.u32 %s233_s22, 4  ;;  %s32_s23 = int_to_ptr.vmem [resolvable:$true] %s31_s23 }
   0x8   :  { %34 = dma.hbm_to_vmem [thread:$0]  %s30_s19, 16, %s32_s23, [#allocation6]  }
   0x9   :  { %224 = dma.done.wait [#allocation3], 256  }
   0xa   :  { %225 = vsyncadd [#allocation3], 4294967040 }
   0xb   :  { %226 = dma.done.wait [#allocation6], 16  }
   0xc   :  { %227 = vsyncadd [#allocation6], 4294967280  ;;  %vm47_vm0 = vcmask 261120   ;;  %v45_v0 = vld [vmem:[#allocation2] sm:$0xff]  ;;  %v46_v2 = vld [vmem:[#allocation2 + $0x8] sm:$0xff]  ;;  %v234_v4 = vmov 32.0  }
   0xd   :  { %v48_v1 = vsel %vm47_vm0, %v45_v0, 0.0  ;;  %v51_v3 = vsel %vm47_vm0, %v46_v2, 0.0  ;;  %146 = vrcp.f32 %v234_v4  ;;  %v144_v35 = vld [vmem:[#allocation5] ss:$0 sm:$0xff]  ;;  %v145_v38 = vld [vmem:[%s276_s2] ss:$0 sm:$0xff] }
   0xe   :  { %49 = vadd.xlane.f32.xlu0 %v48_v1  ;;  %vm113_vm7 = vcmask 257024   ;;  %s235_s24 = smov [#allocation7]   ;;  %s122_s2 = sshll.u32 %s277_s3, 4  ;;  %s123_s2 = int_to_ptr.hbm [resolvable:$true] %s122_s2 }
   0xf   :  { %s120_s25 = sshll.u32 %s235_s24, 4  ;;  %s236_s28 = smov 64   ;;  %s121_s25 = int_to_ptr.vmem [resolvable:$true] %s120_s25 }
  0x10   :  { %s237_s29 = smov 4  }
  0x13   :  { %v147_v5 = vpop.eup %146 }
  0x14   :  { %v55_v6 = vmul.f32 32.0, %v147_v5  ;;  %vm59_vm1 = vweird.f32 %v147_v5 }
  0x16   :  { %52 = vadd.xlane.f32.xlu0 %v51_v3  ;;  %v56_v7 = vsub.f32 1.0, %v55_v6 }
  0x18   :  { %v57_v8 = vmul.f32 %v147_v5, %v56_v7 }
  0x1a   :  { %v58_v9 = vadd.f32 %v147_v5, %v57_v8 }
  0x1c   :  { %v60_v10 = vsel %vm59_vm1, %v147_v5, %v58_v9 }
  0x81   :  { %v50_v11 = vpop.xlane.xlu0 %49 }
  0x82   :  { %v61_v12 = vmul.f32 %v60_v10, %v50_v11 }
  0x84   :  { %v63_v13 = vsub.f32 %v45_v0, %v61_v12 }
  0x86   :  { %v65_v14 = vmul.f32 %v63_v13, %v63_v13 }
  0x88   :  { %v67_v15 = vsel %vm47_vm0, %v65_v14, 0.0 }
  0x89   :  { %68 = vadd.xlane.f32.xlu1 %v67_v15  ;;  %v53_v16 = vpop.xlane.xlu0 %52 }
  0x8a   :  { %v62_v17 = vmul.f32 %v60_v10, %v53_v16 }
  0x8c   :  { %v64_v18 = vsub.f32 %v46_v2, %v62_v17 }
  0x8e   :  { %v66_v19 = vmul.f32 %v64_v18, %v64_v18 }
  0x90   :  { %v70_v20 = vsel %vm47_vm0, %v66_v19, 0.0 }
  0x91   :  { %71 = vadd.xlane.f32.xlu1 %v70_v20 }
  0xfc   :  { %v69_v21 = vpop.xlane.xlu1 %68 }
  0xfd   :  { %v73_v22 = vmul.f32 %v69_v21, %v60_v10 }
  0xff   :  { %v75_v23 = vadd.f32 1e-12, %v73_v22 }
 0x101   :  { %148 = vrsqrt.f32 %v75_v23  ;;  %vm83_vm3 = vweird.f32 %v75_v23 }
 0x104   :  { %v72_v24 = vpop.xlane.xlu1 %71 }
 0x105   :  { %v74_v25 = vmul.f32 %v72_v24, %v60_v10 }
 0x107   :  { %v149_v26 = vpop.eup %148  ;;  %v76_v27 = vadd.f32 1e-12, %v74_v25 }
 0x108   :  { %v78_v28 = vmul.f32 %v149_v26, %v75_v23  ;;  %vm84_vm2 = vweird.f32 %v149_v26 }
 0x109   :  { %150 = vrsqrt.f32 %v76_v27  ;;  %vm85_vm4 = vmor %vm83_vm3, %vm84_vm2  ;;  %vm93_vm6 = vweird.f32 %v76_v27 }
 0x10a   :  { %v79_v29 = vmul.f32 %v149_v26, %v78_v28 }
 0x10c   :  { %v80_v30 = vmul.f32 0.5, %v79_v29 }
 0x10e   :  { %v81_v31 = vsub.f32 1.5, %v80_v30 }
 0x10f   :  { %v151_v32 = vpop.eup %150 }
 0x110   :  { %v82_v33 = vmul.f32 %v149_v26, %v81_v31  ;;  %v88_v34 = vmul.f32 %v151_v32, %v76_v27  ;;  %vm94_vm5 = vweird.f32 %v151_v32 }
 0x111   :  { %vm95_vm8 = vmor %vm93_vm6, %vm94_vm5 }
 0x112   :  { %v86_v36 = vsel %vm85_vm4, %v149_v26, %v82_v33  ;;  %v89_v37 = vmul.f32 %v151_v32, %v88_v34 }
 0x113   :  { %v97_v39 = vmul.f32 %v86_v36, %v63_v13 }
 0x114   :  { %v90_v40 = vmul.f32 0.5, %v89_v37 }
 0x115   :  { %v103_v41 = vmul.f32 %v144_v35, %v97_v39 }
 0x116   :  { %v91_v42 = vsub.f32 1.5, %v90_v40 }
 0x117   :  { %v109_v43 = vadd.f32 %v145_v38, %v103_v41 }
 0x118   :  { %v92_v44 = vmul.f32 %v151_v32, %v91_v42 }
 0x119   :  { %v111_v45 = vpack.c.bf16 %v109_v43, %v109_v43 }
 0x11a   :  { %v96_v46 = vsel %vm95_vm8, %v151_v32, %v92_v44 }
 0x11b   :  { %v98_v47 = vmul.f32 %v96_v46, %v64_v18  ;;  %114 = vst.msk [vmem:[#allocation7] sm:$0xf] %vm113_vm7, %v111_v45 }
 0x11d   :  { %v104_v48 = vmul.f32 %v144_v35, %v98_v47 }
 0x11f   :  { %v110_v49 = vadd.f32 %v145_v38, %v104_v48 }
 0x121   :  { %v112_v50 = vpack.c.bf16 %v110_v49, %v110_v49 }
 0x123   :  { %115 = vst.msk [vmem:[#allocation7 + $0x4] sm:$0xf] %vm113_vm7, %v112_v50 }
 0x124   :  { %128 = dma.vmem_to_hbm [thread:$0]  %s121_s25, 128, %s123_s2, [#allocation4], %s236_s28, %s236_s28, %s237_s29  }
 0x125   :  { %228 = dma.done.wait [#allocation4], 128  }
 0x126   :  { %229 = vsyncadd [#allocation4], 4294967168 }
 0x127   :  { %133 = vsyncpa [#allocation3], 1 }
 0x128   :  { %134 = vsyncpa [#allocation6], 1 }
 0x129   :  { %135 = vsyncpa [#allocation4], 1 }

</bundles_post_ra>
